<compile_context>
chip_gen: v5e
topology: v5e:2x2
jax: 0.10.0
libtpu: 0.0.40
codegen_flags: <defaults>
</compile_context>

<pallas_src>
import functools

import jax
import jax.numpy as jnp
from jax import lax
from jax.experimental import pallas as pl
from jax.experimental.pallas import tpu as pltpu


def _round_up(x, m):
    return ((x + m - 1) // m) * m


def _largest_divisor_leq(n, cap):
    cap = max(1, min(n, cap))
    for d in range(cap, 0, -1):
        if n % d == 0:
            return d
    return 1


def _vmem_capacity_bytes():
    try:
        return int(pltpu.get_tpu_info().vmem_capacity_bytes)
    except Exception:
        return 64 * 1024 * 1024      # conservative fallback (v7x per-core)


def _rnn_chunk_kernel(prex_ref, h0_ref, whh_ref, wlin_ref, out_ref, hfin_ref,
                      *, tt, unroll):
    """One grid step == `tt` timesteps of the tanh recurrence + fused head.

    prex_ref : (tt, Bb, Hp)  x_t @ W_ih^T + (b_ih + b_hh) (precomputed by XLA)
    h0_ref   : (Bb, Hp)      initial hidden state (zero padded)
    whh_ref  : (Hp, Hp)      W_hh^T  (single-buffered; f32 or bf16)
    wlin_ref : (Hp, Op)      W_lin^T (single-buffered; f32 or bf16)
    out_ref  : (tt, Bb, Op)  linear-head output (b_lin added in the wrapper)
    hfin_ref : (Bb, Hp)      resident hidden-state carry == final hidden state
    """
    c = pl.program_id(1)                 # time-chunk index (serial axis)

    @pl.when(c == 0)
    def _():
        hfin_ref[...] = h0_ref[...]

    whh = whh_ref[...]
    wlin = wlin_ref[...]
    h = hfin_ref[...]

    def step(i, h):
        # Only h @ W_hh^T + tanh sit on the serial dependency chain.
        h = jnp.tanh(prex_ref[i] +
                     jnp.dot(h.astype(whh.dtype), whh,
                             preferred_element_type=jnp.float32))
        # Fused linear head: rides off the critical path (MXU has slack).
        out_ref[i] = jnp.dot(h.astype(wlin.dtype), wlin,
                             preferred_element_type=jnp.float32)
        return h

    if unroll is True:
        for i in range(tt):              # fully unrolled (small shapes)
            h = step(i, h)
    else:                                # partial unroll caps vreg pressure
        h = lax.fori_loop(0, tt, step, h, unroll=unroll)

    hfin_ref[...] = h


@functools.partial(jax.jit, static_argnames=("use_bf16_matmul",))
def baseline_rnn_forward(x, h0, w_ih, w_hh, b_ih, b_hh, w_lin, b_lin,
                         use_bf16_matmul=False):
    """
    x    : (B, T, I)   float32
    h0   : (1, B, H)   float32   (num_layers * directions = 1)
    w_ih : (H, I), w_hh: (H, H), b_ih: (H,), b_hh: (H,)  -- PyTorch RNN params
    w_lin: (O, H), b_lin: (O,)                           -- PyTorch Linear

    Returns (h, out) matching PyTorch BaselineRNN.forward:
      h   : (1, B, H)
      out : (B, T, O)
    """
    B, T, I = x.shape
    H = w_hh.shape[0]
    O = w_lin.shape[0]

    # ---- padded tile sizes -------------------------------------------------
    n_b = 2 if _round_up(B, 8) >= 16 else 1     # batch blocks (v7x: 2 cores)
    Bp = _round_up(B, 8 * n_b)                  # sublane alignment per block
    Bb = Bp // n_b
    Hp = _round_up(H, 128)                      # lane alignment
    Op = _round_up(O, 128)                      # lane-dense head stores

    mxu_dtype = jnp.bfloat16 if use_bf16_matmul else jnp.float32
    w_bytes = 2 if use_bf16_matmul else 4
    # TODO(synk): flip use_bf16_matmul on for v6e/v7x at large H once the
    # looser tolerance is acceptable (halves W_hh DMA/VMEM + MXU passes).

    # ---- VMEM budget -> chunk length Tt (must divide T: no masking needed) --
    capacity = _vmem_capacity_bytes()
    budget = min(capacity // 2, 96 * 1024 * 1024)
    fixed = (Hp * Hp + Hp * Op) * w_bytes + 3 * Bb * Hp * 4   # weights, h0, hfin
    per_t = 2 * Bb * (Hp + Op) * 4               # double-buffered pre_x + out
    cap_t = max(1, (budget - fixed) // per_t)
    Tt = _largest_divisor_leq(T, min(cap_t, 128))
    # TODO(synk): for awkward (e.g. prime) long T, specialize only the last
    # chunk instead of accepting a small divisor.

    needed = fixed + per_t * Tt + 2 * Bb * Hp * 4
    vmem_limit = int(min(int(capacity * 0.9),
                         max(needed + (16 << 20), 32 << 20)))

    # inner-loop unroll: full at small shapes, partial when h spans many vregs
    vregs_h = max(1, (Bb // 8) * (Hp // 128))
    if Tt * vregs_h <= 256:
        unroll = True
    else:
        unroll = max(1, min(8, 256 // vregs_h))

    # ---- hoisted input projection: pad the (small) weights / x-batch so the
    # big GEMM writes the padded (T, Bp, Hp) layout directly (no pad pass on
    # the large pre_x tensor, and Tt | T means no time padding either).
    x_p = jnp.pad(x, ((0, Bp - B), (0, 0), (0, 0)))
    w_ih_p = jnp.pad(w_ih, ((0, Hp - H), (0, 0)))
    bias_p = jnp.pad(b_ih + b_hh, ((0, Hp - H),))
    pre_x = jnp.einsum('bti,hi->tbh', x_p, w_ih_p,
                       preferred_element_type=jnp.float32,
                       precision=jax.lax.Precision.HIGHEST)     # (T, Bp, Hp)
    pre_x = pre_x + bias_p.reshape(1, 1, Hp)

    h0_p = jnp.pad(h0.reshape(B, H), ((0, Bp - B), (0, Hp - H)))
    whh_t = jnp.pad(w_hh.T, ((0, Hp - H), (0, Hp - H))).astype(mxu_dtype)
    wlin_t = jnp.pad(w_lin.T, ((0, Hp - H), (0, Op - O))).astype(mxu_dtype)

    kernel = functools.partial(_rnn_chunk_kernel, tt=Tt, unroll=unroll)

    grid_spec = pltpu.PrefetchScalarGridSpec(
        num_scalar_prefetch=0,
        grid=(n_b, T // Tt),
        in_specs=[
            pl.BlockSpec((Tt, Bb, Hp), lambda b, c: (c, b, 0)),   # pre_x chunk
            pl.BlockSpec((Bb, Hp), lambda b, c: (b, 0),
                         pipeline_mode=pl.Buffered(1)),           # h0
            pl.BlockSpec((Hp, Hp), lambda b, c: (0, 0),
                         pipeline_mode=pl.Buffered(1)),           # W_hh^T
            pl.BlockSpec((Hp, Op), lambda b, c: (0, 0),
                         pipeline_mode=pl.Buffered(1)),           # W_lin^T
        ],
        out_specs=[
            pl.BlockSpec((Tt, Bb, Op), lambda b, c: (c, b, 0)),   # head output
            pl.BlockSpec((Bb, Hp), lambda b, c: (b, 0)),          # final hidden
        ],
    )

    out_p, hfin_p = pl.pallas_call(
        kernel,
        grid_spec=grid_spec,
        out_shape=(
            jax.ShapeDtypeStruct((T, Bp, Op), jnp.float32),
            jax.ShapeDtypeStruct((Bp, Hp), jnp.float32),
        ),
        compiler_params=pltpu.CompilerParams(
            dimension_semantics=("parallel", "arbitrary"),  # time is serial
            vmem_limit_bytes=vmem_limit,
        ),
    )(pre_x, h0_p, whh_t, wlin_t)

    # Only the small (B, T, O) result is sliced/transposed; no (T,B,H) pass.
    out = jnp.transpose(out_p[:, :B, :O], (1, 0, 2)) + b_lin
    h = hfin_p[:B, :H].reshape(1, B, H)
    return h, out


def _reference_forward(x, h0, w_ih, w_hh, b_ih, b_hh, w_lin, b_lin):
    """Pure-JAX reference matching torch nn.RNN(tanh, batch_first) + Linear."""
    def step(h, x_t):
        h_new = jnp.tanh(x_t @ w_ih.T + b_ih + h @ w_hh.T + b_hh)
        return h_new, h_new

    h_last, hs = jax.lax.scan(step, h0[0], jnp.transpose(x, (1, 0, 2)))
    out = jnp.transpose(hs, (1, 0, 2)) @ w_lin.T + b_lin
    return h_last[None], out


if __name__ == "__main__":
    # Small shapes consistent with BaselineRNN defaults:
    # lstm=False, num_layers=1, bidirectional=False, tanh nonlinearity.
    B, T, I, H, O = 2, 8, 16, 32, 8

    key = jax.random.PRNGKey(0)
    ks = jax.random.split(key, 8)
    scale = 1.0 / jnp.sqrt(H)

    x = jax.random.normal(ks[0], (B, T, I), dtype=jnp.float32)
    h0 = jnp.zeros((1, B, H), dtype=jnp.float32)   # reset_memory_state()

    w_ih = jax.random.uniform(ks[1], (H, I), jnp.float32, -scale, scale)
    w_hh = jax.random.uniform(ks[2], (H, H), jnp.float32, -scale, scale)
    b_ih = jax.random.uniform(ks[3], (H,), jnp.float32, -scale, scale)
    b_hh = jax.random.uniform(ks[4], (H,), jnp.float32, -scale, scale)
    w_lin = jax.random.uniform(ks[5], (O, H), jnp.float32, -scale, scale)
    b_lin = jax.random.uniform(ks[6], (O,), jnp.float32, -scale, scale)

    h, out = baseline_rnn_forward(x, h0, w_ih, w_hh, b_ih, b_hh, w_lin, b_lin)
    jax.block_until_ready((h, out))

    h_ref, out_ref = _reference_forward(x, h0, w_ih, w_hh, b_ih, b_hh,
                                        w_lin, b_lin)
    assert h.shape == (1, B, H) and out.shape == (B, T, O)
    assert jnp.allclose(h, h_ref, atol=1e-5, rtol=1e-5)
    assert jnp.allclose(out, out_ref, atol=1e-5, rtol=1e-5)

    print("KERNEL_OK")
</pallas_src>

<mosaic_0001>
module attributes {stable_mosaic.version = 11 : i64} {
  func.func @_rnn_chunk_kernel(%arg0: i32, %arg1: i32, %arg2: memref<8x8x128xf32, #tpu.memory_space<vmem>>, %arg3: memref<8x128xf32, #tpu.memory_space<vmem>>, %arg4: memref<128x128xf32, #tpu.memory_space<vmem>>, %arg5: memref<128x128xf32, #tpu.memory_space<vmem>>, %arg6: memref<8x8x128xf32, #tpu.memory_space<vmem>>, %arg7: memref<8x128xf32, #tpu.memory_space<vmem>>) attributes {dimension_semantics = [#tpu.dimension_semantics<parallel>, #tpu.dimension_semantics<arbitrary>], iteration_bounds = array<i64: 1, 1>, scalar_prefetch = 0 : i64, scratch_operands = 0 : i64, tpu.core_type = #tpu.core_type<tc>, window_params = [{transform_indices = @transform_0, window_bounds = array<i64: 8, 8, 128>}, {pipeline_mode = #tpu.pipeline_mode<synchronous>, transform_indices = @transform_1, window_bounds = array<i64: 8, 128>}, {pipeline_mode = #tpu.pipeline_mode<synchronous>, transform_indices = @transform_2, window_bounds = array<i64: 128, 128>}, {pipeline_mode = #tpu.pipeline_mode<synchronous>, transform_indices = @transform_3, window_bounds = array<i64: 128, 128>}, {transform_indices = @transform_4, window_bounds = array<i64: 8, 8, 128>}, {transform_indices = @transform_5, window_bounds = array<i64: 8, 128>}]} {
    %c0_i32 = arith.constant 0 : i32
    %0 = arith.cmpi eq, %arg1, %c0_i32 : i32
    %1 = arith.extui %0 : i1 to i32
    %c0_i32_0 = arith.constant 0 : i32
    %2 = arith.cmpi ne, %1, %c0_i32_0 : i32
    scf.if %2 {
      %c0_64 = arith.constant 0 : index
      %c0_65 = arith.constant 0 : index
      %79 = vector.load %arg3[%c0_64, %c0_65] : memref<8x128xf32, #tpu.memory_space<vmem>>, vector<8x128xf32>
      %c0_66 = arith.constant 0 : index
      %c0_67 = arith.constant 0 : index
      %80 = vector.load %arg7[%c0_66, %c0_67] : memref<8x128xf32, #tpu.memory_space<vmem>>, vector<8x128xf32>
      tpu.vector_store %arg7[%c0_66, %c0_67], %79 {strides = array<i32>} : memref<8x128xf32, #tpu.memory_space<vmem>>, vector<8x128xf32>,
    } else {
    }
    %c0 = arith.constant 0 : index
    %c0_1 = arith.constant 0 : index
    %3 = vector.load %arg4[%c0, %c0_1] : memref<128x128xf32, #tpu.memory_space<vmem>>, vector<128x128xf32>
    %c0_2 = arith.constant 0 : index
    %c0_3 = arith.constant 0 : index
    %4 = vector.load %arg5[%c0_2, %c0_3] : memref<128x128xf32, #tpu.memory_space<vmem>>, vector<128x128xf32>
    %c0_4 = arith.constant 0 : index
    %c0_5 = arith.constant 0 : index
    %5 = vector.load %arg7[%c0_4, %c0_5] : memref<8x128xf32, #tpu.memory_space<vmem>>, vector<8x128xf32>
    %c0_6 = arith.constant 0 : index
    %c0_7 = arith.constant 0 : index
    %c0_8 = arith.constant 0 : index
    %6 = vector.load %arg2[%c0_6, %c0_7, %c0_8] : memref<8x8x128xf32, #tpu.memory_space<vmem>>, vector<1x8x128xf32>
    %7 = vector.shape_cast %6 : vector<1x8x128xf32> to vector<8x128xf32>
    %cst = arith.constant dense<0.000000e+00> : vector<8x128xf32>
    %8 = tpu.matmul %5, %3, %cst {dimension_numbers = #tpu.dot_dimension_numbers<[1], [0], [0], [1], [0, 0, 1, 1], [], []>} : vector<8x128xf32>, vector<128x128xf32>, vector<8x128xf32> -> vector<8x128xf32>
    %9 = arith.addf %7, %8 : vector<8x128xf32>
    %10 = math.tanh %9 : vector<8x128xf32>
    %cst_9 = arith.constant dense<0.000000e+00> : vector<8x128xf32>
    %11 = tpu.matmul %10, %4, %cst_9 {dimension_numbers = #tpu.dot_dimension_numbers<[1], [0], [0], [1], [0, 0, 1, 1], [], []>} : vector<8x128xf32>, vector<128x128xf32>, vector<8x128xf32> -> vector<8x128xf32>
    %c0_10 = arith.constant 0 : index
    %c0_11 = arith.constant 0 : index
    %c0_12 = arith.constant 0 : index
    %12 = vector.load %arg6[%c0_10, %c0_11, %c0_12] : memref<8x8x128xf32, #tpu.memory_space<vmem>>, vector<1x8x128xf32>
    %13 = vector.shape_cast %12 : vector<1x8x128xf32> to vector<8x128xf32>
    %14 = vector.shape_cast %11 : vector<8x128xf32> to vector<1x8x128xf32>
    tpu.vector_store %arg6[%c0_10, %c0_11, %c0_12], %14 {strides = array<i32>} : memref<8x8x128xf32, #tpu.memory_space<vmem>>, vector<1x8x128xf32>,
    %c1 = arith.constant 1 : index
    %c0_13 = arith.constant 0 : index
    %c0_14 = arith.constant 0 : index
    %15 = vector.load %arg2[%c1, %c0_13, %c0_14] : memref<8x8x128xf32, #tpu.memory_space<vmem>>, vector<1x8x128xf32>
    %16 = vector.shape_cast %15 : vector<1x8x128xf32> to vector<8x128xf32>
    %cst_15 = arith.constant dense<0.000000e+00> : vector<8x128xf32>
    %17 = tpu.matmul %10, %3, %cst_15 {dimension_numbers = #tpu.dot_dimension_numbers<[1], [0], [0], [1], [0, 0, 1, 1], [], []>} : vector<8x128xf32>, vector<128x128xf32>, vector<8x128xf32> -> vector<8x128xf32>
    %18 = arith.addf %16, %17 : vector<8x128xf32>
    %19 = math.tanh %18 : vector<8x128xf32>
    %cst_16 = arith.constant dense<0.000000e+00> : vector<8x128xf32>
    %20 = tpu.matmul %19, %4, %cst_16 {dimension_numbers = #tpu.dot_dimension_numbers<[1], [0], [0], [1], [0, 0, 1, 1], [], []>} : vector<8x128xf32>, vector<128x128xf32>, vector<8x128xf32> -> vector<8x128xf32>
    %c1_17 = arith.constant 1 : index
    %c0_18 = arith.constant 0 : index
    %c0_19 = arith.constant 0 : index
    %21 = vector.load %arg6[%c1_17, %c0_18, %c0_19] : memref<8x8x128xf32, #tpu.memory_space<vmem>>, vector<1x8x128xf32>
    %22 = vector.shape_cast %21 : vector<1x8x128xf32> to vector<8x128xf32>
    %23 = vector.shape_cast %20 : vector<8x128xf32> to vector<1x8x128xf32>
    tpu.vector_store %arg6[%c1_17, %c0_18, %c0_19], %23 {strides = array<i32>} : memref<8x8x128xf32, #tpu.memory_space<vmem>>, vector<1x8x128xf32>,
    %c2 = arith.constant 2 : index
    %c0_20 = arith.constant 0 : index
    %c0_21 = arith.constant 0 : index
    %24 = vector.load %arg2[%c2, %c0_20, %c0_21] : memref<8x8x128xf32, #tpu.memory_space<vmem>>, vector<1x8x128xf32>
    %25 = vector.shape_cast %24 : vector<1x8x128xf32> to vector<8x128xf32>
    %cst_22 = arith.constant dense<0.000000e+00> : vector<8x128xf32>
    %26 = tpu.matmul %19, %3, %cst_22 {dimension_numbers = #tpu.dot_dimension_numbers<[1], [0], [0], [1], [0, 0, 1, 1], [], []>} : vector<8x128xf32>, vector<128x128xf32>, vector<8x128xf32> -> vector<8x128xf32>
    %27 = arith.addf %25, %26 : vector<8x128xf32>
    %28 = math.tanh %27 : vector<8x128xf32>
    %cst_23 = arith.constant dense<0.000000e+00> : vector<8x128xf32>
    %29 = tpu.matmul %28, %4, %cst_23 {dimension_numbers = #tpu.dot_dimension_numbers<[1], [0], [0], [1], [0, 0, 1, 1], [], []>} : vector<8x128xf32>, vector<128x128xf32>, vector<8x128xf32> -> vector<8x128xf32>
    %c2_24 = arith.constant 2 : index
    %c0_25 = arith.constant 0 : index
    %c0_26 = arith.constant 0 : index
    %30 = vector.load %arg6[%c2_24, %c0_25, %c0_26] : memref<8x8x128xf32, #tpu.memory_space<vmem>>, vector<1x8x128xf32>
    %31 = vector.shape_cast %30 : vector<1x8x128xf32> to vector<8x128xf32>
    %32 = vector.shape_cast %29 : vector<8x128xf32> to vector<1x8x128xf32>
    tpu.vector_store %arg6[%c2_24, %c0_25, %c0_26], %32 {strides = array<i32>} : memref<8x8x128xf32, #tpu.memory_space<vmem>>, vector<1x8x128xf32>,
    %c3 = arith.constant 3 : index
    %c0_27 = arith.constant 0 : index
    %c0_28 = arith.constant 0 : index
    %33 = vector.load %arg2[%c3, %c0_27, %c0_28] : memref<8x8x128xf32, #tpu.memory_space<vmem>>, vector<1x8x128xf32>
    %34 = vector.shape_cast %33 : vector<1x8x128xf32> to vector<8x128xf32>
    %cst_29 = arith.constant dense<0.000000e+00> : vector<8x128xf32>
    %35 = tpu.matmul %28, %3, %cst_29 {dimension_numbers = #tpu.dot_dimension_numbers<[1], [0], [0], [1], [0, 0, 1, 1], [], []>} : vector<8x128xf32>, vector<128x128xf32>, vector<8x128xf32> -> vector<8x128xf32>
    %36 = arith.addf %34, %35 : vector<8x128xf32>
    %37 = math.tanh %36 : vector<8x128xf32>
    %cst_30 = arith.constant dense<0.000000e+00> : vector<8x128xf32>
    %38 = tpu.matmul %37, %4, %cst_30 {dimension_numbers = #tpu.dot_dimension_numbers<[1], [0], [0], [1], [0, 0, 1, 1], [], []>} : vector<8x128xf32>, vector<128x128xf32>, vector<8x128xf32> -> vector<8x128xf32>
    %c3_31 = arith.constant 3 : index
    %c0_32 = arith.constant 0 : index
    %c0_33 = arith.constant 0 : index
    %39 = vector.load %arg6[%c3_31, %c0_32, %c0_33] : memref<8x8x128xf32, #tpu.memory_space<vmem>>, vector<1x8x128xf32>
    %40 = vector.shape_cast %39 : vector<1x8x128xf32> to vector<8x128xf32>
    %41 = vector.shape_cast %38 : vector<8x128xf32> to vector<1x8x128xf32>
    tpu.vector_store %arg6[%c3_31, %c0_32, %c0_33], %41 {strides = array<i32>} : memref<8x8x128xf32, #tpu.memory_space<vmem>>, vector<1x8x128xf32>,
    %c4 = arith.constant 4 : index
    %c0_34 = arith.constant 0 : index
    %c0_35 = arith.constant 0 : index
    %42 = vector.load %arg2[%c4, %c0_34, %c0_35] : memref<8x8x128xf32, #tpu.memory_space<vmem>>, vector<1x8x128xf32>
    %43 = vector.shape_cast %42 : vector<1x8x128xf32> to vector<8x128xf32>
    %cst_36 = arith.constant dense<0.000000e+00> : vector<8x128xf32>
    %44 = tpu.matmul %37, %3, %cst_36 {dimension_numbers = #tpu.dot_dimension_numbers<[1], [0], [0], [1], [0, 0, 1, 1], [], []>} : vector<8x128xf32>, vector<128x128xf32>, vector<8x128xf32> -> vector<8x128xf32>
    %45 = arith.addf %43, %44 : vector<8x128xf32>
    %46 = math.tanh %45 : vector<8x128xf32>
    %cst_37 = arith.constant dense<0.000000e+00> : vector<8x128xf32>
    %47 = tpu.matmul %46, %4, %cst_37 {dimension_numbers = #tpu.dot_dimension_numbers<[1], [0], [0], [1], [0, 0, 1, 1], [], []>} : vector<8x128xf32>, vector<128x128xf32>, vector<8x128xf32> -> vector<8x128xf32>
    %c4_38 = arith.constant 4 : index
    %c0_39 = arith.constant 0 : index
    %c0_40 = arith.constant 0 : index
    %48 = vector.load %arg6[%c4_38, %c0_39, %c0_40] : memref<8x8x128xf32, #tpu.memory_space<vmem>>, vector<1x8x128xf32>
    %49 = vector.shape_cast %48 : vector<1x8x128xf32> to vector<8x128xf32>
    %50 = vector.shape_cast %47 : vector<8x128xf32> to vector<1x8x128xf32>
    tpu.vector_store %arg6[%c4_38, %c0_39, %c0_40], %50 {strides = array<i32>} : memref<8x8x128xf32, #tpu.memory_space<vmem>>, vector<1x8x128xf32>,
    %c5 = arith.constant 5 : index
    %c0_41 = arith.constant 0 : index
    %c0_42 = arith.constant 0 : index
    %51 = vector.load %arg2[%c5, %c0_41, %c0_42] : memref<8x8x128xf32, #tpu.memory_space<vmem>>, vector<1x8x128xf32>
    %52 = vector.shape_cast %51 : vector<1x8x128xf32> to vector<8x128xf32>
    %cst_43 = arith.constant dense<0.000000e+00> : vector<8x128xf32>
    %53 = tpu.matmul %46, %3, %cst_43 {dimension_numbers = #tpu.dot_dimension_numbers<[1], [0], [0], [1], [0, 0, 1, 1], [], []>} : vector<8x128xf32>, vector<128x128xf32>, vector<8x128xf32> -> vector<8x128xf32>
    %54 = arith.addf %52, %53 : vector<8x128xf32>
    %55 = math.tanh %54 : vector<8x128xf32>
    %cst_44 = arith.constant dense<0.000000e+00> : vector<8x128xf32>
    %56 = tpu.matmul %55, %4, %cst_44 {dimension_numbers = #tpu.dot_dimension_numbers<[1], [0], [0], [1], [0, 0, 1, 1], [], []>} : vector<8x128xf32>, vector<128x128xf32>, vector<8x128xf32> -> vector<8x128xf32>
    %c5_45 = arith.constant 5 : index
    %c0_46 = arith.constant 0 : index
    %c0_47 = arith.constant 0 : index
    %57 = vector.load %arg6[%c5_45, %c0_46, %c0_47] : memref<8x8x128xf32, #tpu.memory_space<vmem>>, vector<1x8x128xf32>
    %58 = vector.shape_cast %57 : vector<1x8x128xf32> to vector<8x128xf32>
    %59 = vector.shape_cast %56 : vector<8x128xf32> to vector<1x8x128xf32>
    tpu.vector_store %arg6[%c5_45, %c0_46, %c0_47], %59 {strides = array<i32>} : memref<8x8x128xf32, #tpu.memory_space<vmem>>, vector<1x8x128xf32>,
    %c6 = arith.constant 6 : index
    %c0_48 = arith.constant 0 : index
    %c0_49 = arith.constant 0 : index
    %60 = vector.load %arg2[%c6, %c0_48, %c0_49] : memref<8x8x128xf32, #tpu.memory_space<vmem>>, vector<1x8x128xf32>
    %61 = vector.shape_cast %60 : vector<1x8x128xf32> to vector<8x128xf32>
    %cst_50 = arith.constant dense<0.000000e+00> : vector<8x128xf32>
    %62 = tpu.matmul %55, %3, %cst_50 {dimension_numbers = #tpu.dot_dimension_numbers<[1], [0], [0], [1], [0, 0, 1, 1], [], []>} : vector<8x128xf32>, vector<128x128xf32>, vector<8x128xf32> -> vector<8x128xf32>
    %63 = arith.addf %61, %62 : vector<8x128xf32>
    %64 = math.tanh %63 : vector<8x128xf32>
    %cst_51 = arith.constant dense<0.000000e+00> : vector<8x128xf32>
    %65 = tpu.matmul %64, %4, %cst_51 {dimension_numbers = #tpu.dot_dimension_numbers<[1], [0], [0], [1], [0, 0, 1, 1], [], []>} : vector<8x128xf32>, vector<128x128xf32>, vector<8x128xf32> -> vector<8x128xf32>
    %c6_52 = arith.constant 6 : index
    %c0_53 = arith.constant 0 : index
    %c0_54 = arith.constant 0 : index
    %66 = vector.load %arg6[%c6_52, %c0_53, %c0_54] : memref<8x8x128xf32, #tpu.memory_space<vmem>>, vector<1x8x128xf32>
    %67 = vector.shape_cast %66 : vector<1x8x128xf32> to vector<8x128xf32>
    %68 = vector.shape_cast %65 : vector<8x128xf32> to vector<1x8x128xf32>
    tpu.vector_store %arg6[%c6_52, %c0_53, %c0_54], %68 {strides = array<i32>} : memref<8x8x128xf32, #tpu.memory_space<vmem>>, vector<1x8x128xf32>,
    %c7 = arith.constant 7 : index
    %c0_55 = arith.constant 0 : index
    %c0_56 = arith.constant 0 : index
    %69 = vector.load %arg2[%c7, %c0_55, %c0_56] : memref<8x8x128xf32, #tpu.memory_space<vmem>>, vector<1x8x128xf32>
    %70 = vector.shape_cast %69 : vector<1x8x128xf32> to vector<8x128xf32>
    %cst_57 = arith.constant dense<0.000000e+00> : vector<8x128xf32>
    %71 = tpu.matmul %64, %3, %cst_57 {dimension_numbers = #tpu.dot_dimension_numbers<[1], [0], [0], [1], [0, 0, 1, 1], [], []>} : vector<8x128xf32>, vector<128x128xf32>, vector<8x128xf32> -> vector<8x128xf32>
    %72 = arith.addf %70, %71 : vector<8x128xf32>
    %73 = math.tanh %72 : vector<8x128xf32>
    %cst_58 = arith.constant dense<0.000000e+00> : vector<8x128xf32>
    %74 = tpu.matmul %73, %4, %cst_58 {dimension_numbers = #tpu.dot_dimension_numbers<[1], [0], [0], [1], [0, 0, 1, 1], [], []>} : vector<8x128xf32>, vector<128x128xf32>, vector<8x128xf32> -> vector<8x128xf32>
    %c7_59 = arith.constant 7 : index
    %c0_60 = arith.constant 0 : index
    %c0_61 = arith.constant 0 : index
    %75 = vector.load %arg6[%c7_59, %c0_60, %c0_61] : memref<8x8x128xf32, #tpu.memory_space<vmem>>, vector<1x8x128xf32>
    %76 = vector.shape_cast %75 : vector<1x8x128xf32> to vector<8x128xf32>
    %77 = vector.shape_cast %74 : vector<8x128xf32> to vector<1x8x128xf32>
    tpu.vector_store %arg6[%c7_59, %c0_60, %c0_61], %77 {strides = array<i32>} : memref<8x8x128xf32, #tpu.memory_space<vmem>>, vector<1x8x128xf32>,
    %c0_62 = arith.constant 0 : index
    %c0_63 = arith.constant 0 : index
    %78 = vector.load %arg7[%c0_62, %c0_63] : memref<8x128xf32, #tpu.memory_space<vmem>>, vector<8x128xf32>
    tpu.vector_store %arg7[%c0_62, %c0_63], %73 {strides = array<i32>} : memref<8x128xf32, #tpu.memory_space<vmem>>, vector<8x128xf32>,
    return
  }
  func.func @transform_0(%arg0: i32, %arg1: i32) -> (i32, i32, i32) {
    %c0_i32 = arith.constant 0 : i32
    %c0_i32_0 = arith.constant 0 : i32
    return %arg1, %arg0, %c0_i32 : i32, i32, i32
  }
  func.func @transform_1(%arg0: i32, %arg1: i32) -> (i32, i32) {
    %c0_i32 = arith.constant 0 : i32
    %c0_i32_0 = arith.constant 0 : i32
    return %arg0, %c0_i32 : i32, i32
  }
  func.func @transform_2(%arg0: i32, %arg1: i32) -> (i32, i32) {
    %c0_i32 = arith.constant 0 : i32
    %c0_i32_0 = arith.constant 0 : i32
    %c0_i32_1 = arith.constant 0 : i32
    return %c0_i32, %c0_i32_0 : i32, i32
  }
  func.func @transform_3(%arg0: i32, %arg1: i32) -> (i32, i32) {
    %c0_i32 = arith.constant 0 : i32
    %c0_i32_0 = arith.constant 0 : i32
    %c0_i32_1 = arith.constant 0 : i32
    return %c0_i32, %c0_i32_0 : i32, i32
  }
  func.func @transform_4(%arg0: i32, %arg1: i32) -> (i32, i32, i32) {
    %c0_i32 = arith.constant 0 : i32
    %c0_i32_0 = arith.constant 0 : i32
    return %arg1, %arg0, %c0_i32 : i32, i32, i32
  }
  func.func @transform_5(%arg0: i32, %arg1: i32) -> (i32, i32) {
    %c0_i32 = arith.constant 0 : i32
    %c0_i32_0 = arith.constant 0 : i32
    return %arg0, %c0_i32 : i32, i32
  }
}

</mosaic_0001>

<bundles_post_ra>
// kernel: baseline_rnn_forward.1
= control target key start
LH: loop header
LB: loop body
LE: loop exit
PB: predicated region body
PF: predicated region fallthrough
CT: control target
= control target key end

     0   :  { %s963_s2 = inlined_call_operand.vmem [shape: f32[128,128], index: 2, kind: input, shape index: {}]   ;;  %s964_s3 = inlined_call_operand.vmem [shape: f32[128,128], index: 3, kind: input, shape index: {}]   ;;  %s965_s1 = inlined_call_operand.vmem [shape: f32[8,128], index: 1, kind: input, shape index: {}]   ;;  %s966_s0 = inlined_call_operand.vmem [shape: f32[8,8,128], index: 0, kind: input, shape index: {}]   ;;  %s967_s4 = inlined_call_operand.vmem [shape: f32[8,8,128], index: 4, kind: output, shape index: {0}]   ;;  %s968_s5 = inlined_call_operand.vmem [shape: f32[8,128], index: 5, kind: output, shape index: {1}]  }
   0x1   :  { %v496_v0 = vld [vmem:[%s963_s2 + $0x78] sm:$0xff]  ;;  %v501_v1 = vld [vmem:[%s963_s2 + $0x70] sm:$0xff]  ;;  %v508_v2 = vld [vmem:[%s963_s2 + $0x68] sm:$0xff] }
   0x2   :  { %59 = vmatpush.msra.mxu0 %v496_v0  ;;  %104 = vmatpush.msra.mxu2 %v496_v0  ;;  %v515_v3 = vld [vmem:[%s963_s2 + $0x60] sm:$0xff]  ;;  %v521_v4 = vld [vmem:[%s964_s3 + $0x78] sm:$0xff]  ;;  %v533_v6 = vld [vmem:[%s964_s3 + $0x70] sm:$0xff] }
   0x3   :  { %v527_v5 = vld [vmem:[%s963_s2 + $0x58] sm:$0xff]  ;;  %81 = vmatpush.msra.mxu1 %v521_v4  ;;  %126 = vmatpush.msra.mxu3 %v521_v4  ;;  %v540_v7 = vld [vmem:[%s964_s3 + $0x68] sm:$0xff]  ;;  %v546_v8 = vld [vmem:[%s963_s2 + $0x50] sm:$0xff] }
   0x4   :  { %60 = vmatpush.msra.mxu0 %v501_v1  ;;  %105 = vmatpush.msra.mxu2 %v501_v1  ;;  %v554_v9 = vld [vmem:[%s964_s3 + $0x60] sm:$0xff]  ;;  %v560_v10 = vld [vmem:[%s963_s2 + $0x48] sm:$0xff]  ;;  %v568_v11 = vld [vmem:[%s964_s3 + $0x58] sm:$0xff] }
   0x5   :  { %82 = vmatpush.msra.mxu1 %v533_v6  ;;  %127 = vmatpush.msra.mxu3 %v533_v6  ;;  %v574_v12 = vld [vmem:[%s963_s2 + $0x40] sm:$0xff]  ;;  %v582_v13 = vld [vmem:[%s964_s3 + $0x50] sm:$0xff]  ;;  %v588_v14 = vld [vmem:[%s963_s2 + $0x38] sm:$0xff] }
   0x6   :  { %61 = vmatpush.msra.mxu0 %v508_v2  ;;  %106 = vmatpush.msra.mxu2 %v508_v2  ;;  %v596_v15 = vld [vmem:[%s964_s3 + $0x48] sm:$0xff]  ;;  %v602_v16 = vld [vmem:[%s963_s2 + $0x30] sm:$0xff]  ;;  %v610_v17 = vld [vmem:[%s964_s3 + $0x40] sm:$0xff] }
   0x7   :  { %83 = vmatpush.msra.mxu1 %v540_v7  ;;  %128 = vmatpush.msra.mxu3 %v540_v7  ;;  %v616_v18 = vld [vmem:[%s963_s2 + $0x28] sm:$0xff]  ;;  %v624_v19 = vld [vmem:[%s964_s3 + $0x38] sm:$0xff]  ;;  %v630_v20 = vld [vmem:[%s963_s2 + $0x20] sm:$0xff] }
   0x8   :  { %62 = vmatpush.msra.mxu0 %v515_v3  ;;  %107 = vmatpush.msra.mxu2 %v515_v3  ;;  %v638_v21 = vld [vmem:[%s964_s3 + $0x30] sm:$0xff]  ;;  %v644_v22 = vld [vmem:[%s963_s2 + $0x18] sm:$0xff]  ;;  %v652_v23 = vld [vmem:[%s964_s3 + $0x28] sm:$0xff] }
   0x9   :  { %84 = vmatpush.msra.mxu1 %v554_v9  ;;  %129 = vmatpush.msra.mxu3 %v554_v9  ;;  %v658_v24 = vld [vmem:[%s963_s2 + $0x10] sm:$0xff]  ;;  %v667_v25 = vld [vmem:[%s963_s2 + $0x8] sm:$0xff]  ;;  %v676_v26 = vld [vmem:[%s963_s2] sm:$0xff] }
   0xa   :  { %63 = vmatpush.msra.mxu0 %v527_v5  ;;  %108 = vmatpush.msra.mxu2 %v527_v5  ;;  %v23_v27 = vld [vmem:[%s965_s1] sm:$0xff]  ;;  %v743_v29 = vld [vmem:[%s964_s3 + $0x18] sm:$0xff]  ;;  %v749_v30 = vld [vmem:[%s964_s3 + $0x10] sm:$0xff] }
   0xb   :  { %85 = vmatpush.msra.mxu1 %v568_v11  ;;  %130 = vmatpush.msra.mxu3 %v568_v11  ;;  %v736_v28 = vld [vmem:[%s964_s3 + $0x20] sm:$0xff]  ;;  %v755_v31 = vld [vmem:[%s964_s3 + $0x8] sm:$0xff]  ;;  %v435_v42 = vld [vmem:[%s966_s0 + $0x10] sm:$0xff] }
   0xc   :  { %64 = vmatpush.msra.mxu0 %v546_v8  ;;  %109 = vmatpush.msra.mxu2 %v546_v8  ;;  %v762_v32 = vld [vmem:[%s964_s3] sm:$0xff]  ;;  %v433_v38 = vld [vmem:[%s966_s0 + $0x8] sm:$0xff]  ;;  %v437_v48 = vld [vmem:[%s966_s0 + $0x18] sm:$0xff] }
   0xd   :  { %86 = vmatpush.msra.mxu1 %v582_v13  ;;  %131 = vmatpush.msra.mxu3 %v582_v13  ;;  %v58_v33 = vld [vmem:[%s966_s0] sm:$0xff]  ;;  %v441_v58 = vld [vmem:[%s966_s0 + $0x28] sm:$0xff]  ;;  %v443_v62 = vld [vmem:[%s966_s0 + $0x30] sm:$0xff] }
   0xe   :  { %65 = vmatpush.msra.mxu0 %v560_v10  ;;  %110 = vmatpush.msra.mxu2 %v560_v10  ;;  %v439_v52 = vld [vmem:[%s966_s0 + $0x20] sm:$0xff] }
   0xf   :  { %87 = vmatpush.msra.mxu1 %v596_v15  ;;  %132 = vmatpush.msra.mxu3 %v596_v15 }
  0x10   :  { %66 = vmatpush.msra.mxu0 %v574_v12  ;;  %111 = vmatpush.msra.mxu2 %v574_v12 }
  0x11   :  { %88 = vmatpush.msra.mxu1 %v610_v17  ;;  %133 = vmatpush.msra.mxu3 %v610_v17 }
  0x12   :  { %67 = vmatpush.msra.mxu0 %v588_v14  ;;  %112 = vmatpush.msra.mxu2 %v588_v14 }
  0x13   :  { %89 = vmatpush.msra.mxu1 %v624_v19  ;;  %134 = vmatpush.msra.mxu3 %v624_v19 }
  0x14   :  { %68 = vmatpush.msra.mxu0 %v602_v16  ;;  %113 = vmatpush.msra.mxu2 %v602_v16 }
  0x15   :  { %90 = vmatpush.msra.mxu1 %v638_v21  ;;  %135 = vmatpush.msra.mxu3 %v638_v21 }
  0x16   :  { %69 = vmatpush.msra.mxu0 %v616_v18  ;;  %114 = vmatpush.msra.mxu2 %v616_v18 }
  0x17   :  { %91 = vmatpush.msra.mxu1 %v652_v23  ;;  %136 = vmatpush.msra.mxu3 %v652_v23 }
  0x18   :  { %70 = vmatpush.msra.mxu0 %v630_v20  ;;  %115 = vmatpush.msra.mxu2 %v630_v20 }
  0x19   :  { %92 = vmatpush.msra.mxu1 %v736_v28  ;;  %137 = vmatpush.msra.mxu3 %v736_v28 }
  0x1a   :  { %71 = vmatpush.msra.mxu0 %v644_v22  ;;  %116 = vmatpush.msra.mxu2 %v644_v22 }
  0x1b   :  { %93 = vmatpush.msra.mxu1 %v743_v29  ;;  %138 = vmatpush.msra.mxu3 %v743_v29 }
  0x1c   :  { %72 = vmatpush.msra.mxu0 %v658_v24  ;;  %117 = vmatpush.msra.mxu2 %v658_v24 }
  0x1d   :  { %94 = vmatpush.msra.mxu1 %v749_v30  ;;  %139 = vmatpush.msra.mxu3 %v749_v30 }
  0x1e   :  { %73 = vmatpush.msra.mxu0 %v667_v25  ;;  %118 = vmatpush.msra.mxu2 %v667_v25 }
  0x1f   :  { %95 = vmatpush.msra.mxu1 %v755_v31  ;;  %140 = vmatpush.msra.mxu3 %v755_v31 }
  0x20   :  { %74 = vmatpush.msra.mxu0 %v676_v26  ;;  %119 = vmatpush.msra.mxu2 %v676_v26 }
  0x21   :  { %75 = vmatmul.f32.vlgmr.msra.gmra.mxu0 %v23_v27  ;;  %96 = vmatpush.msra.mxu1 %v762_v32 }
  0x22   :  { %196 = vmatpush.msrb.mxu2 %v496_v0  ;;  %150 = vmatpush.msrb.mxu0 %v496_v0 }
  0x23   :  { %141 = vmatpush.msra.mxu3 %v762_v32  ;;  %172 = vmatpush.msrb.mxu1 %v521_v4 }
  0x24   :  { %197 = vmatpush.msrb.mxu2 %v501_v1  ;;  %151 = vmatpush.msrb.mxu0 %v501_v1 }
  0x25   :  { %218 = vmatpush.msrb.mxu3 %v521_v4  ;;  %173 = vmatpush.msrb.mxu1 %v533_v6 }
  0x26   :  { %198 = vmatpush.msrb.mxu2 %v508_v2  ;;  %152 = vmatpush.msrb.mxu0 %v508_v2 }
  0x27   :  { %219 = vmatpush.msrb.mxu3 %v533_v6  ;;  %174 = vmatpush.msrb.mxu1 %v540_v7 }
  0x28   :  { %199 = vmatpush.msrb.mxu2 %v515_v3  ;;  %153 = vmatpush.msrb.mxu0 %v515_v3 }
  0x29   :  { %220 = vmatpush.msrb.mxu3 %v540_v7  ;;  %175 = vmatpush.msrb.mxu1 %v554_v9 }
  0x2a   :  { %200 = vmatpush.msrb.mxu2 %v527_v5  ;;  %154 = vmatpush.msrb.mxu0 %v527_v5 }
  0x2b   :  { %221 = vmatpush.msrb.mxu3 %v554_v9  ;;  %176 = vmatpush.msrb.mxu1 %v568_v11 }
  0x2c   :  { %201 = vmatpush.msrb.mxu2 %v546_v8  ;;  %155 = vmatpush.msrb.mxu0 %v546_v8 }
  0x2d   :  { %222 = vmatpush.msrb.mxu3 %v568_v11  ;;  %177 = vmatpush.msrb.mxu1 %v582_v13 }
  0x2e   :  { %202 = vmatpush.msrb.mxu2 %v560_v10  ;;  %156 = vmatpush.msrb.mxu0 %v560_v10 }
  0x2f   :  { %223 = vmatpush.msrb.mxu3 %v582_v13  ;;  %178 = vmatpush.msrb.mxu1 %v596_v15 }
  0x30   :  { %203 = vmatpush.msrb.mxu2 %v574_v12  ;;  %157 = vmatpush.msrb.mxu0 %v574_v12 }
  0x31   :  { %224 = vmatpush.msrb.mxu3 %v596_v15  ;;  %179 = vmatpush.msrb.mxu1 %v610_v17 }
  0x32   :  { %204 = vmatpush.msrb.mxu2 %v588_v14  ;;  %158 = vmatpush.msrb.mxu0 %v588_v14 }
  0x33   :  { %225 = vmatpush.msrb.mxu3 %v610_v17  ;;  %180 = vmatpush.msrb.mxu1 %v624_v19 }
  0x34   :  { %205 = vmatpush.msrb.mxu2 %v602_v16  ;;  %159 = vmatpush.msrb.mxu0 %v602_v16 }
  0x35   :  { %226 = vmatpush.msrb.mxu3 %v624_v19  ;;  %181 = vmatpush.msrb.mxu1 %v638_v21 }
  0x36   :  { %206 = vmatpush.msrb.mxu2 %v616_v18  ;;  %160 = vmatpush.msrb.mxu0 %v616_v18 }
  0x37   :  { %227 = vmatpush.msrb.mxu3 %v638_v21  ;;  %182 = vmatpush.msrb.mxu1 %v652_v23 }
  0x38   :  { %207 = vmatpush.msrb.mxu2 %v630_v20  ;;  %161 = vmatpush.msrb.mxu0 %v630_v20 }
  0x39   :  { %228 = vmatpush.msrb.mxu3 %v652_v23  ;;  %183 = vmatpush.msrb.mxu1 %v736_v28 }
  0x3a   :  { %208 = vmatpush.msrb.mxu2 %v644_v22  ;;  %162 = vmatpush.msrb.mxu0 %v644_v22 }
  0x3b   :  { %229 = vmatpush.msrb.mxu3 %v736_v28  ;;  %184 = vmatpush.msrb.mxu1 %v743_v29 }
  0x3c   :  { %209 = vmatpush.msrb.mxu2 %v658_v24  ;;  %163 = vmatpush.msrb.mxu0 %v658_v24 }
  0x3d   :  { %230 = vmatpush.msrb.mxu3 %v743_v29  ;;  %185 = vmatpush.msrb.mxu1 %v749_v30 }
  0x3e   :  { %210 = vmatpush.msrb.mxu2 %v667_v25  ;;  %164 = vmatpush.msrb.mxu0 %v667_v25 }
  0x3f   :  { %231 = vmatpush.msrb.mxu3 %v749_v30  ;;  %186 = vmatpush.msrb.mxu1 %v755_v31 }
  0x40   :  { %211 = vmatpush.msrb.mxu2 %v676_v26  ;;  %165 = vmatpush.msrb.mxu0 %v676_v26 }
  0x41   :  { %232 = vmatpush.msrb.mxu3 %v755_v31  ;;  %187 = vmatpush.msrb.mxu1 %v762_v32 }
  0x42   :  { %242 = vmatpush.msra.mxu0 %v496_v0 }
  0x43   :  { %233 = vmatpush.msrb.mxu3 %v762_v32 }
  0x44   :  { %243 = vmatpush.msra.mxu0 %v501_v1 }
  0x46   :  { %244 = vmatpush.msra.mxu0 %v508_v2 }
  0x48   :  { %245 = vmatpush.msra.mxu0 %v515_v3 }
  0x4a   :  { %246 = vmatpush.msra.mxu0 %v527_v5 }
  0x4c   :  { %247 = vmatpush.msra.mxu0 %v546_v8 }
  0x4e   :  { %248 = vmatpush.msra.mxu0 %v560_v10 }
  0x50   :  { %249 = vmatpush.msra.mxu0 %v574_v12 }
  0x52   :  { %250 = vmatpush.msra.mxu0 %v588_v14 }
  0x54   :  { %251 = vmatpush.msra.mxu0 %v602_v16 }
  0x56   :  { %252 = vmatpush.msra.mxu0 %v616_v18 }
  0x58   :  { %253 = vmatpush.msra.mxu0 %v630_v20 }
  0x5a   :  { %254 = vmatpush.msra.mxu0 %v644_v22 }
  0x5c   :  { %255 = vmatpush.msra.mxu0 %v658_v24 }
  0x5e   :  { %256 = vmatpush.msra.mxu0 %v667_v25 }
  0x60   :  { %257 = vmatpush.msra.mxu0 %v676_v26 }
  0x9e   :  { %v76_v34 = vpop.f32.mrf.mxu0 }
  0x9f   :  { %v79_v35 = vadd.f32 %v76_v34, %v58_v33 }
  0xa1   :  { %447 = vtanh.f32 %v79_v35 }
  0xa7   :  { %v448_v36 = vpop.eup %447 }
  0xa8   :  { %97 = vmatmul.f32.vlgmr.msra.gmra.mxu1 %v448_v36  ;;  %120 = vmatmul.f32.vlgmr.msra.gmra.mxu2 %v448_v36 }
  0xa9   :  { %264 = vmatpush.msra.mxu1 %v521_v4  ;;  %288 = vmatpush.msra.mxu2 %v496_v0 }
  0xab   :  { %265 = vmatpush.msra.mxu1 %v533_v6  ;;  %289 = vmatpush.msra.mxu2 %v501_v1 }
  0xad   :  { %266 = vmatpush.msra.mxu1 %v540_v7  ;;  %290 = vmatpush.msra.mxu2 %v508_v2 }
  0xaf   :  { %267 = vmatpush.msra.mxu1 %v554_v9  ;;  %291 = vmatpush.msra.mxu2 %v515_v3 }
  0xb1   :  { %268 = vmatpush.msra.mxu1 %v568_v11  ;;  %292 = vmatpush.msra.mxu2 %v527_v5 }
  0xb3   :  { %269 = vmatpush.msra.mxu1 %v582_v13  ;;  %293 = vmatpush.msra.mxu2 %v546_v8 }
  0xb5   :  { %270 = vmatpush.msra.mxu1 %v596_v15  ;;  %294 = vmatpush.msra.mxu2 %v560_v10 }
  0xb7   :  { %271 = vmatpush.msra.mxu1 %v610_v17  ;;  %295 = vmatpush.msra.mxu2 %v574_v12 }
  0xb9   :  { %272 = vmatpush.msra.mxu1 %v624_v19  ;;  %296 = vmatpush.msra.mxu2 %v588_v14 }
  0xbb   :  { %273 = vmatpush.msra.mxu1 %v638_v21  ;;  %297 = vmatpush.msra.mxu2 %v602_v16 }
  0xbd   :  { %274 = vmatpush.msra.mxu1 %v652_v23  ;;  %298 = vmatpush.msra.mxu2 %v616_v18 }
  0xbf   :  { %275 = vmatpush.msra.mxu1 %v736_v28  ;;  %299 = vmatpush.msra.mxu2 %v630_v20 }
  0xc1   :  { %276 = vmatpush.msra.mxu1 %v743_v29  ;;  %300 = vmatpush.msra.mxu2 %v644_v22 }
  0xc3   :  { %277 = vmatpush.msra.mxu1 %v749_v30  ;;  %301 = vmatpush.msra.mxu2 %v658_v24 }
  0xc5   :  { %278 = vmatpush.msra.mxu1 %v755_v31  ;;  %302 = vmatpush.msra.mxu2 %v667_v25 }
  0xc7   :  { %279 = vmatpush.msra.mxu1 %v762_v32  ;;  %303 = vmatpush.msra.mxu2 %v676_v26 }
 0x125   :  { %v98_v37 = vpop.f32.mrf.mxu1 }
 0x126   :  { %101 = vst [vmem:[%s967_s4] sm:$0xff] %v98_v37 }
 0x12b   :  { %v121_v39 = vpop.f32.mrf.mxu2 }
 0x12c   :  { %v124_v40 = vadd.f32 %v433_v38, %v121_v39 }
 0x12e   :  { %449 = vtanh.f32 %v124_v40 }
 0x134   :  { %v450_v41 = vpop.eup %449 }
 0x135   :  { %142 = vmatmul.f32.vlgmr.msra.gmra.mxu3 %v450_v41  ;;  %166 = vmatmul.f32.vlgmr.msrb.gmra.mxu0 %v450_v41 }
 0x136   :  { %310 = vmatpush.msra.mxu3 %v521_v4  ;;  %334 = vmatpush.msrb.mxu0 %v496_v0 }
 0x138   :  { %311 = vmatpush.msra.mxu3 %v533_v6  ;;  %335 = vmatpush.msrb.mxu0 %v501_v1 }
 0x13a   :  { %312 = vmatpush.msra.mxu3 %v540_v7  ;;  %336 = vmatpush.msrb.mxu0 %v508_v2 }
 0x13c   :  { %313 = vmatpush.msra.mxu3 %v554_v9  ;;  %337 = vmatpush.msrb.mxu0 %v515_v3 }
 0x13e   :  { %314 = vmatpush.msra.mxu3 %v568_v11  ;;  %338 = vmatpush.msrb.mxu0 %v527_v5 }
 0x140   :  { %315 = vmatpush.msra.mxu3 %v582_v13  ;;  %339 = vmatpush.msrb.mxu0 %v546_v8 }
 0x142   :  { %316 = vmatpush.msra.mxu3 %v596_v15  ;;  %340 = vmatpush.msrb.mxu0 %v560_v10 }
 0x144   :  { %317 = vmatpush.msra.mxu3 %v610_v17  ;;  %341 = vmatpush.msrb.mxu0 %v574_v12 }
 0x146   :  { %318 = vmatpush.msra.mxu3 %v624_v19  ;;  %342 = vmatpush.msrb.mxu0 %v588_v14 }
 0x148   :  { %319 = vmatpush.msra.mxu3 %v638_v21  ;;  %343 = vmatpush.msrb.mxu0 %v602_v16 }
 0x14a   :  { %320 = vmatpush.msra.mxu3 %v652_v23  ;;  %344 = vmatpush.msrb.mxu0 %v616_v18 }
 0x14c   :  { %321 = vmatpush.msra.mxu3 %v736_v28  ;;  %345 = vmatpush.msrb.mxu0 %v630_v20 }
 0x14e   :  { %322 = vmatpush.msra.mxu3 %v743_v29  ;;  %346 = vmatpush.msrb.mxu0 %v644_v22 }
 0x150   :  { %323 = vmatpush.msra.mxu3 %v749_v30  ;;  %347 = vmatpush.msrb.mxu0 %v658_v24 }
 0x152   :  { %324 = vmatpush.msra.mxu3 %v755_v31  ;;  %348 = vmatpush.msrb.mxu0 %v667_v25 }
 0x154   :  { %325 = vmatpush.msra.mxu3 %v762_v32  ;;  %349 = vmatpush.msrb.mxu0 %v676_v26 }
 0x1b2   :  { %v167_v43 = vpop.f32.mrf.mxu0 }
 0x1b3   :  { %v170_v44 = vadd.f32 %v435_v42, %v167_v43 }
 0x1b5   :  { %451 = vtanh.f32 %v170_v44 }
 0x1b8   :  { %v143_v45 = vpop.f32.mrf.mxu3 }
 0x1b9   :  { %434 = vst [vmem:[%s967_s4 + $0x8] sm:$0xff] %v143_v45 }
 0x1bb   :  { %v452_v46 = vpop.eup %451 }
 0x1bc   :  { %188 = vmatmul.f32.vlgmr.msrb.gmra.mxu1 %v452_v46  ;;  %212 = vmatmul.f32.vlgmr.msrb.gmra.mxu2 %v452_v46 }
 0x1bd   :  { %356 = vmatpush.msrb.mxu1 %v521_v4  ;;  %380 = vmatpush.msrb.mxu2 %v496_v0 }
 0x1bf   :  { %357 = vmatpush.msrb.mxu1 %v533_v6  ;;  %381 = vmatpush.msrb.mxu2 %v501_v1 }
 0x1c1   :  { %358 = vmatpush.msrb.mxu1 %v540_v7  ;;  %382 = vmatpush.msrb.mxu2 %v508_v2 }
 0x1c3   :  { %359 = vmatpush.msrb.mxu1 %v554_v9  ;;  %383 = vmatpush.msrb.mxu2 %v515_v3 }
 0x1c5   :  { %360 = vmatpush.msrb.mxu1 %v568_v11  ;;  %384 = vmatpush.msrb.mxu2 %v527_v5 }
 0x1c7   :  { %361 = vmatpush.msrb.mxu1 %v582_v13  ;;  %385 = vmatpush.msrb.mxu2 %v546_v8 }
 0x1c9   :  { %362 = vmatpush.msrb.mxu1 %v596_v15  ;;  %386 = vmatpush.msrb.mxu2 %v560_v10 }
 0x1cb   :  { %363 = vmatpush.msrb.mxu1 %v610_v17  ;;  %387 = vmatpush.msrb.mxu2 %v574_v12 }
 0x1cd   :  { %364 = vmatpush.msrb.mxu1 %v624_v19  ;;  %388 = vmatpush.msrb.mxu2 %v588_v14 }
 0x1cf   :  { %365 = vmatpush.msrb.mxu1 %v638_v21  ;;  %389 = vmatpush.msrb.mxu2 %v602_v16 }
 0x1d1   :  { %366 = vmatpush.msrb.mxu1 %v652_v23  ;;  %390 = vmatpush.msrb.mxu2 %v616_v18 }
 0x1d3   :  { %367 = vmatpush.msrb.mxu1 %v736_v28  ;;  %391 = vmatpush.msrb.mxu2 %v630_v20 }
 0x1d5   :  { %368 = vmatpush.msrb.mxu1 %v743_v29  ;;  %392 = vmatpush.msrb.mxu2 %v644_v22 }
 0x1d7   :  { %369 = vmatpush.msrb.mxu1 %v749_v30  ;;  %393 = vmatpush.msrb.mxu2 %v658_v24 }
 0x1d9   :  { %370 = vmatpush.msrb.mxu1 %v755_v31  ;;  %394 = vmatpush.msrb.mxu2 %v667_v25 }
 0x1db   :  { %371 = vmatpush.msrb.mxu1 %v762_v32  ;;  %395 = vmatpush.msrb.mxu2 %v676_v26 }
 0x239   :  { %v189_v47 = vpop.f32.mrf.mxu1 }
 0x23a   :  { %436 = vst [vmem:[%s967_s4 + $0x10] sm:$0xff] %v189_v47 }
 0x23f   :  { %v213_v49 = vpop.f32.mrf.mxu2 }
 0x240   :  { %v216_v50 = vadd.f32 %v437_v48, %v213_v49 }
 0x242   :  { %453 = vtanh.f32 %v216_v50 }
 0x248   :  { %v454_v51 = vpop.eup %453 }
 0x249   :  { %234 = vmatmul.f32.vlgmr.msrb.gmra.mxu3 %v454_v51  ;;  %258 = vmatmul.f32.vlgmr.msra.gmra.mxu0 %v454_v51 }
 0x24a   :  { %402 = vmatpush.msrb.mxu3 %v521_v4  ;;  %v445_v4 = vld [vmem:[%s966_s0 + $0x38] sm:$0xff] }
 0x24c   :  { %403 = vmatpush.msrb.mxu3 %v533_v6 }
 0x24e   :  { %404 = vmatpush.msrb.mxu3 %v540_v7 }
 0x250   :  { %405 = vmatpush.msrb.mxu3 %v554_v9 }
 0x252   :  { %406 = vmatpush.msrb.mxu3 %v568_v11 }
 0x254   :  { %407 = vmatpush.msrb.mxu3 %v582_v13 }
 0x256   :  { %408 = vmatpush.msrb.mxu3 %v596_v15 }
 0x258   :  { %409 = vmatpush.msrb.mxu3 %v610_v17 }
 0x25a   :  { %410 = vmatpush.msrb.mxu3 %v624_v19 }
 0x25c   :  { %411 = vmatpush.msrb.mxu3 %v638_v21 }
 0x25e   :  { %412 = vmatpush.msrb.mxu3 %v652_v23 }
 0x260   :  { %413 = vmatpush.msrb.mxu3 %v736_v28 }
 0x262   :  { %414 = vmatpush.msrb.mxu3 %v743_v29 }
 0x264   :  { %415 = vmatpush.msrb.mxu3 %v749_v30 }
 0x266   :  { %416 = vmatpush.msrb.mxu3 %v755_v31 }
 0x268   :  { %417 = vmatpush.msrb.mxu3 %v762_v32 }
 0x2c6   :  { %v259_v53 = vpop.f32.mrf.mxu0 }
 0x2c7   :  { %v262_v54 = vadd.f32 %v439_v52, %v259_v53 }
 0x2c9   :  { %455 = vtanh.f32 %v262_v54 }
 0x2cc   :  { %v235_v55 = vpop.f32.mrf.mxu3 }
 0x2cd   :  { %438 = vst [vmem:[%s967_s4 + $0x18] sm:$0xff] %v235_v55 }
 0x2cf   :  { %v456_v56 = vpop.eup %455 }
 0x2d0   :  { %280 = vmatmul.f32.vlgmr.msra.gmra.mxu1 %v456_v56  ;;  %304 = vmatmul.f32.vlgmr.msra.gmra.mxu2 %v456_v56 }
 0x34d   :  { %v281_v57 = vpop.f32.mrf.mxu1 }
 0x34e   :  { %440 = vst [vmem:[%s967_s4 + $0x20] sm:$0xff] %v281_v57 }
 0x353   :  { %v305_v59 = vpop.f32.mrf.mxu2 }
 0x354   :  { %v308_v60 = vadd.f32 %v441_v58, %v305_v59 }
 0x356   :  { %457 = vtanh.f32 %v308_v60 }
 0x35c   :  { %v458_v61 = vpop.eup %457 }
 0x35d   :  { %326 = vmatmul.f32.vlgmr.msra.gmra.mxu3 %v458_v61  ;;  %350 = vmatmul.f32.vlgmr.msrb.gmra.mxu0 %v458_v61 }
 0x3da   :  { %v351_v63 = vpop.f32.mrf.mxu0 }
 0x3db   :  { %v354_v0 = vadd.f32 %v443_v62, %v351_v63 }
 0x3dd   :  { %459 = vtanh.f32 %v354_v0 }
 0x3e0   :  { %v327_v1 = vpop.f32.mrf.mxu3 }
 0x3e1   :  { %442 = vst [vmem:[%s967_s4 + $0x28] sm:$0xff] %v327_v1 }
 0x3e3   :  { %v460_v2 = vpop.eup %459 }
 0x3e4   :  { %372 = vmatmul.f32.vlgmr.msrb.gmra.mxu1 %v460_v2  ;;  %396 = vmatmul.f32.vlgmr.msrb.gmra.mxu2 %v460_v2 }
 0x461   :  { %v373_v3 = vpop.f32.mrf.mxu1 }
 0x462   :  { %444 = vst [vmem:[%s967_s4 + $0x30] sm:$0xff] %v373_v3 }
 0x467   :  { %v397_v5 = vpop.f32.mrf.mxu2 }
 0x468   :  { %v400_v6 = vadd.f32 %v445_v4, %v397_v5 }
 0x46a   :  { %461 = vtanh.f32 %v400_v6 }
 0x470   :  { %v462_v7 = vpop.eup %461 }
 0x471   :  { %424 = vst [vmem:[%s968_s5] sm:$0xff] %v462_v7  ;;  %418 = vmatmul.f32.vlgmr.msrb.gmra.mxu3 %v462_v7 }
 0x4f4   :  { %v419_v8 = vpop.f32.mrf.mxu3 }
 0x4f5   :  { %446 = vst [vmem:[%s967_s4 + $0x38] sm:$0xff] %v419_v8 }

</bundles_post_ra>
